<compile_context>
chip_gen: v6e
topology: v6e:2x2x1
jax: 0.10.0
libtpu: 0.0.40
codegen_flags: <defaults>
</compile_context>

<pallas_src>
import jax
import jax.numpy as jnp
from jax.experimental import pallas as pl
from jax.experimental.pallas import tpu as pltpu


def _silu(v):
    # Exact SiLU: v * sigmoid(v).  exp() goes to the EUP; the divide is tiny here
    # and keeping it exact lets the kernel match the pure-JAX reference tightly.
    return v / (1.0 + jnp.exp(-v))


def denoiser_kernel(x_ref, sigma_ref, wemb_ref, bemb_ref, b1_ref,
                    w1_ref, w2_ref, b2_ref, out_ref):
    # x_ref:     (B, D)  f32 noisy input               (resident)
    # sigma_ref: (B, 1)  f32 noise levels              (resident)
    # wemb_ref:  (1, H)  f32 sigma-embedding weight    (resident)
    # bemb_ref:  (1, H)  f32 sigma-embedding bias      (resident)
    # b1_ref:    (1, H)  f32 first-layer bias          (resident)
    # w1_ref:    (D, H)  bf16 first-layer weight       (resident)
    # w2_ref:    (H, D)  bf16 second-layer weight      (resident)
    # b2_ref:    (1, D)  f32 second-layer bias         (resident)
    # out_ref:   (B, D)  f32 denoised output
    x = x_ref[...]
    sigma = sigma_ref[...]                              # (B, 1)

    # EDM preconditioning coefficients (exact; (B,1) scalars per row).
    s2p1 = sigma * sigma + 1.0
    c_skip = 1.0 / s2p1
    c_in = 1.0 / jnp.sqrt(s2p1)
    c_out = sigma * c_in                                # sigma / sqrt(sigma^2 + 1)
    c_noise = 10.0 * jnp.log(sigma)                     # (B, 1)

    # Sigma embedding: SiLU(c_noise * w_emb + b_emb)    -> (B, H)
    emb = _silu(c_noise * wemb_ref[...] + bemb_ref[...])

    # Backbone layer 1: bf16 activations x bf16 weights, f32 accumulation on the MXU.
    xin = (c_in * x).astype(jnp.bfloat16)               # (B, D)
    h_pre = (jnp.dot(xin, w1_ref[...], preferred_element_type=jnp.float32)
             + b1_ref[...] + emb)                       # (B, H)
    h = _silu(h_pre).astype(jnp.bfloat16)

    # Backbone layer 2 + fused EDM epilogue.
    f = (jnp.dot(h, w2_ref[...], preferred_element_type=jnp.float32)
         + b2_ref[...])                                 # (B, D)
    out_ref[...] = c_skip * x + c_out * f


def poseidon_denoiser(x_t, sigma_t, params):
    """Pallas wrapper. x_t: (B, D) f32, sigma_t: (B, 1) f32, w1/w2 in bf16.

    Single grid step: all operands resident in VMEM (working set < 0.5 MiB at the
    shipped shapes), so there is no pipeline / per-step overhead and each weight is
    read from HBM exactly once.
    """
    B, D = x_t.shape
    w_emb, b_emb, b1, w1, w2, b2 = params
    H = w1.shape[1]

    weight_bytes = (w1.size + w2.size) * 2              # bf16, read once each
    small_bytes = (x_t.size * 2 + sigma_t.size + w_emb.size + b_emb.size
                   + b1.size + b2.size) * 4             # f32 in + out
    cost = pl.CostEstimate(
        flops=4 * B * D * H,                            # two (B,D)x(D,H)-class matmuls
        transcendentals=2 * B * H + B,                  # SiLU exps + log(sigma)
        bytes_accessed=int(weight_bytes + small_bytes),
    )

    vmem_spec = pl.BlockSpec(memory_space=pltpu.MemorySpace.VMEM)

    return pl.pallas_call(
        denoiser_kernel,
        out_shape=jax.ShapeDtypeStruct((B, D), jnp.float32),
        in_specs=[vmem_spec] * 8,
        out_specs=vmem_spec,
        cost_estimate=cost,
    )(x_t, sigma_t, w_emb, b_emb, b1, w1, w2, b2)


def reference_denoiser(x_t, sigma_t, params):
    """Pure-JAX reference (same bf16 weight / activation rounding as the kernel)."""
    w_emb, b_emb, b1, w1, w2, b2 = params
    s2p1 = sigma_t ** 2 + 1.0
    c_skip = 1.0 / s2p1
    c_out = sigma_t / jnp.sqrt(s2p1)
    c_in = 1.0 / jnp.sqrt(s2p1)
    c_noise = 10.0 * jnp.log(sigma_t)

    emb = jax.nn.silu(c_noise * w_emb + b_emb)
    xin = (c_in * x_t).astype(jnp.bfloat16)
    h = jnp.dot(xin, w1, preferred_element_type=jnp.float32) + b1 + emb
    h = jax.nn.silu(h)
    f = jnp.dot(h.astype(jnp.bfloat16), w2, preferred_element_type=jnp.float32) + b2
    return c_skip * x_t + c_out * f


if __name__ == "__main__":
    # Small shapes consistent with the module's (B, C*K*X*Y) convention.
    B, C, K, X, Y = 8, 4, 2, 8, 8
    D = C * K * X * Y          # 512
    H = 128                    # backbone hidden width

    key = jax.random.PRNGKey(0)
    kx, ks, k0, k1, k2, k3, k4, k5 = jax.random.split(key, 8)

    x_t = jax.random.normal(kx, (B, D), dtype=jnp.float32)
    # sigma_t must be positive (log); sample log-normal style noise levels.
    sigma_t = jnp.exp(jax.random.normal(ks, (B, 1), dtype=jnp.float32) * 0.5)

    # Deterministic synthetic backbone parameters; matmul weights stored in bf16.
    w_emb = jax.random.normal(k0, (1, H), dtype=jnp.float32) * 0.1
    b_emb = jax.random.normal(k1, (1, H), dtype=jnp.float32) * 0.01
    b1 = jax.random.normal(k3, (1, H), dtype=jnp.float32) * 0.01
    w1 = (jax.random.normal(k2, (D, H), dtype=jnp.float32) * (D ** -0.5)).astype(jnp.bfloat16)
    w2 = (jax.random.normal(k4, (H, D), dtype=jnp.float32) * (H ** -0.5)).astype(jnp.bfloat16)
    b2 = jax.random.normal(k5, (1, D), dtype=jnp.float32) * 0.01
    params = (w_emb, b_emb, b1, w1, w2, b2)

    out = poseidon_denoiser(x_t, sigma_t, params)
    out = jax.block_until_ready(out)

    ref = reference_denoiser(x_t, sigma_t, params)
    assert out.shape == (B, D)
    max_err = float(jnp.max(jnp.abs(out - ref)))
    assert jnp.allclose(out, ref, atol=2e-3, rtol=2e-3), (
        f"mismatch vs reference, max abs err {max_err}")

    print("KERNEL_OK")
</pallas_src>

<mosaic_0001>
module attributes {stable_mosaic.version = 11 : i64} {
  func.func @denoiser_kernel(%arg0: memref<8x512xf32, #tpu.memory_space<vmem>>, %arg1: memref<8x1xf32, #tpu.memory_space<vmem>>, %arg2: memref<1x128xf32, #tpu.memory_space<vmem>>, %arg3: memref<1x128xf32, #tpu.memory_space<vmem>>, %arg4: memref<1x128xf32, #tpu.memory_space<vmem>>, %arg5: memref<512x128xbf16, #tpu.memory_space<vmem>>, %arg6: memref<128x512xbf16, #tpu.memory_space<vmem>>, %arg7: memref<1x512xf32, #tpu.memory_space<vmem>>, %arg8: memref<8x512xf32, #tpu.memory_space<vmem>>) attributes {dimension_semantics = [], scalar_prefetch = 0 : i64, scratch_operands = 0 : i64, tpu.core_type = #tpu.core_type<tc>} {
    %c0 = arith.constant 0 : index
    %c0_0 = arith.constant 0 : index
    %0 = vector.load %arg0[%c0, %c0_0] : memref<8x512xf32, #tpu.memory_space<vmem>>, vector<8x512xf32>
    %c0_1 = arith.constant 0 : index
    %c0_2 = arith.constant 0 : index
    %1 = vector.load %arg1[%c0_1, %c0_2] : memref<8x1xf32, #tpu.memory_space<vmem>>, vector<8x1xf32>
    %2 = arith.mulf %1, %1 : vector<8x1xf32>
    %cst = arith.constant 1.000000e+00 : f32
    %3 = vector.broadcast %cst : f32 to vector<8x1xf32>
    %4 = arith.addf %2, %3 : vector<8x1xf32>
    %cst_3 = arith.constant 1.000000e+00 : f32
    %5 = vector.broadcast %cst_3 : f32 to vector<8x1xf32>
    %6 = arith.divf %5, %4 : vector<8x1xf32>
    %7 = math.sqrt %4 : vector<8x1xf32>
    %cst_4 = arith.constant 1.000000e+00 : f32
    %8 = vector.broadcast %cst_4 : f32 to vector<8x1xf32>
    %9 = arith.divf %8, %7 : vector<8x1xf32>
    %10 = arith.mulf %1, %9 : vector<8x1xf32>
    %11 = math.log %1 : vector<8x1xf32>
    %cst_5 = arith.constant 1.000000e+01 : f32
    %12 = vector.broadcast %cst_5 : f32 to vector<8x1xf32>
    %13 = arith.mulf %12, %11 : vector<8x1xf32>
    %c0_6 = arith.constant 0 : index
    %c0_7 = arith.constant 0 : index
    %14 = vector.load %arg2[%c0_6, %c0_7] : memref<1x128xf32, #tpu.memory_space<vmem>>, vector<1x128xf32>
    %15 = vector.broadcast %13 : vector<8x1xf32> to vector<8x128xf32>
    %16 = vector.broadcast %14 : vector<1x128xf32> to vector<8x128xf32>
    %17 = arith.mulf %15, %16 : vector<8x128xf32>
    %c0_8 = arith.constant 0 : index
    %c0_9 = arith.constant 0 : index
    %18 = vector.load %arg3[%c0_8, %c0_9] : memref<1x128xf32, #tpu.memory_space<vmem>>, vector<1x128xf32>
    %19 = vector.broadcast %18 : vector<1x128xf32> to vector<8x128xf32>
    %20 = arith.addf %17, %19 : vector<8x128xf32>
    %cst_10 = arith.constant 0.000000e+00 : f32
    %21 = vector.broadcast %cst_10 : f32 to vector<8x128xf32>
    %22 = arith.subf %21, %20 : vector<8x128xf32>
    %23 = math.exp %22 : vector<8x128xf32>
    %cst_11 = arith.constant 1.000000e+00 : f32
    %24 = vector.broadcast %cst_11 : f32 to vector<8x128xf32>
    %25 = arith.addf %24, %23 : vector<8x128xf32>
    %26 = arith.divf %20, %25 : vector<8x128xf32>
    %27 = vector.broadcast %9 : vector<8x1xf32> to vector<8x512xf32>
    %28 = arith.mulf %27, %0 : vector<8x512xf32>
    %29 = arith.truncf %28 : vector<8x512xf32> to vector<8x512xbf16>
    %c0_12 = arith.constant 0 : index
    %c0_13 = arith.constant 0 : index
    %30 = vector.load %arg5[%c0_12, %c0_13] : memref<512x128xbf16, #tpu.memory_space<vmem>>, vector<512x128xbf16>
    %cst_14 = arith.constant dense<0.000000e+00> : vector<8x128xf32>
    %31 = tpu.matmul %29, %30, %cst_14 {dimension_numbers = #tpu.dot_dimension_numbers<[1], [0], [0], [1], [0, 0, 1, 1], [], []>} : vector<8x512xbf16>, vector<512x128xbf16>, vector<8x128xf32> -> vector<8x128xf32>
    %c0_15 = arith.constant 0 : index
    %c0_16 = arith.constant 0 : index
    %32 = vector.load %arg4[%c0_15, %c0_16] : memref<1x128xf32, #tpu.memory_space<vmem>>, vector<1x128xf32>
    %33 = vector.broadcast %32 : vector<1x128xf32> to vector<8x128xf32>
    %34 = arith.addf %31, %33 : vector<8x128xf32>
    %35 = arith.addf %34, %26 : vector<8x128xf32>
    %cst_17 = arith.constant 0.000000e+00 : f32
    %36 = vector.broadcast %cst_17 : f32 to vector<8x128xf32>
    %37 = arith.subf %36, %35 : vector<8x128xf32>
    %38 = math.exp %37 : vector<8x128xf32>
    %cst_18 = arith.constant 1.000000e+00 : f32
    %39 = vector.broadcast %cst_18 : f32 to vector<8x128xf32>
    %40 = arith.addf %39, %38 : vector<8x128xf32>
    %41 = arith.divf %35, %40 : vector<8x128xf32>
    %42 = arith.truncf %41 : vector<8x128xf32> to vector<8x128xbf16>
    %c0_19 = arith.constant 0 : index
    %c0_20 = arith.constant 0 : index
    %43 = vector.load %arg6[%c0_19, %c0_20] : memref<128x512xbf16, #tpu.memory_space<vmem>>, vector<128x512xbf16>
    %cst_21 = arith.constant dense<0.000000e+00> : vector<8x512xf32>
    %44 = tpu.matmul %42, %43, %cst_21 {dimension_numbers = #tpu.dot_dimension_numbers<[1], [0], [0], [1], [0, 0, 1, 1], [], []>} : vector<8x128xbf16>, vector<128x512xbf16>, vector<8x512xf32> -> vector<8x512xf32>
    %c0_22 = arith.constant 0 : index
    %c0_23 = arith.constant 0 : index
    %45 = vector.load %arg7[%c0_22, %c0_23] : memref<1x512xf32, #tpu.memory_space<vmem>>, vector<1x512xf32>
    %46 = vector.broadcast %45 : vector<1x512xf32> to vector<8x512xf32>
    %47 = arith.addf %44, %46 : vector<8x512xf32>
    %48 = vector.broadcast %6 : vector<8x1xf32> to vector<8x512xf32>
    %49 = arith.mulf %48, %0 : vector<8x512xf32>
    %50 = vector.broadcast %10 : vector<8x1xf32> to vector<8x512xf32>
    %51 = arith.mulf %50, %47 : vector<8x512xf32>
    %52 = arith.addf %49, %51 : vector<8x512xf32>
    %c0_24 = arith.constant 0 : index
    %c0_25 = arith.constant 0 : index
    %53 = vector.load %arg8[%c0_24, %c0_25] : memref<8x512xf32, #tpu.memory_space<vmem>>, vector<8x512xf32>
    tpu.vector_store %arg8[%c0_24, %c0_25], %52 {strides = array<i32>} : memref<8x512xf32, #tpu.memory_space<vmem>>, vector<8x512xf32>,
    return
  }
}

</mosaic_0001>

<bundles_post_ra>
// kernel: tpu_custom_call.1
= control target key start
LH: loop header
LB: loop body
LE: loop exit
PB: predicated region body
PF: predicated region fallthrough
CT: control target
= control target key end

     0   :  { %13 = vsyncpa [#allocation3], 0  ;;  %s1245_s0 = inlined_call_operand.hbm [shape: f32[8,512], index: 0, kind: input, shape index: {}]   ;;  %s1246_s1 = inlined_call_operand.vmem [shape: f32[8,1], index: 1, kind: input, shape index: {}]   ;;  %s1247_s2 = inlined_call_operand.vmem [shape: f32[1,128], index: 2, kind: input, shape index: {}]   ;;  %s1248_s3 = inlined_call_operand.vmem [shape: f32[1,128], index: 3, kind: input, shape index: {}]   ;;  %s1249_s4 = inlined_call_operand.vmem [shape: f32[1,128], index: 4, kind: input, shape index: {}]   ;;  %s1250_s5 = inlined_call_operand.hbm [shape: bf16[512,128], index: 5, kind: input, shape index: {}]   ;;  %s1251_s6 = inlined_call_operand.hbm [shape: bf16[128,512], index: 6, kind: input, shape index: {}]   ;;  %s1252_s7 = inlined_call_operand.vmem [shape: f32[1,512], index: 7, kind: input, shape index: {}]   ;;  %s1253_s8 = inlined_call_operand.hbm [shape: f32[8,512], index: 8, kind: output, shape index: {}]  }
   0x1   :  { %14 = vsyncpa [#allocation6], 0 }
   0x2   :  { %15 = vsyncpa [#allocation4], 0  ;;  %s1125_s27 = smov [#allocation5]  }
   0x3   :  { %s39_s28 = sshll.u32 %s1125_s27, 4  ;;  %s40_s28 = int_to_ptr.vmem [resolvable:$true] %s39_s28 }
   0x4   :  { %s1047_s29 = scalar_lea.vmem %s40_s28, 4096  ;;  %p1052_p1 = scmp.lt.s32.totalorder %s40_s28, %s40_s28 }
   0x5   :  { %p1048_p0 = scmp.ne.s32.totalorder %s40_s28, %s1047_s29  ;;  %p1053_p2 = scmp.lt.s32.totalorder %s1047_s29, %s1047_s29 }
   0x7   :  { %p1054_p3 = por %p1053_p2, %p1052_p1 }
   0x9   :  { %p1055_p4 = pnand %p1054_p3, %p1048_p0 }
   0xb   :  { %1058 = shalt.err (!%p1055_p4)
}
   0xc   :  { %s1126_s30 = smov 64   ;;  %s1127_s9 = smov 4  }
   0xd   :  { %45 = dma.hbm_to_vmem [thread:$0]  %s1250_s5, 4096, %s40_s28, [#allocation6], %s1126_s30, %s1126_s30, %s1127_s9  }
   0xe   :  { %s1128_s12 = smov [#allocation2]   ;;  %s1129_s14 = smov [#allocation7]  }
   0xf   :  { %s22_s13 = sshll.u32 %s1128_s12, 4  ;;  %s51_s15 = sshll.u32 %s1129_s14, 4  ;;  %s23_s13 = int_to_ptr.vmem [resolvable:$true] %s22_s13  ;;  %s52_s15 = int_to_ptr.vmem [resolvable:$true] %s51_s15 }
  0x10   :  { %s1067_s16 = scalar_lea.vmem %s23_s13, 512  ;;  %p1072_p6 = scmp.lt.s32.totalorder %s23_s13, %s23_s13 }
  0x11   :  { %p1068_p5 = scmp.ne.s32.totalorder %s23_s13, %s1067_s16  ;;  %p1073_p7 = scmp.lt.s32.totalorder %s1067_s16, %s1067_s16 }
  0x13   :  { %p1074_p8 = por %p1073_p7, %p1072_p6 }
  0x15   :  { %p1075_p9 = pnand %p1074_p8, %p1068_p5 }
  0x17   :  { %1078 = shalt.err (!%p1075_p9)
}
  0x18   :  { %25 = dma.hbm_to_vmem [thread:$0]  %s1245_s0, 512, %s23_s13, [#allocation3]  }
  0x19   :  { %s1087_s19 = scalar_lea.vmem %s52_s15, 4096  ;;  %p1092_p11 = scmp.lt.s32.totalorder %s52_s15, %s52_s15 }
  0x1a   :  { %p1088_p10 = scmp.ne.s32.totalorder %s52_s15, %s1087_s19  ;;  %p1093_p12 = scmp.lt.s32.totalorder %s1087_s19, %s1087_s19 }
  0x1c   :  { %p1094_p13 = por %p1093_p12, %p1092_p11 }
  0x1e   :  { %p1095_p0 = pnand %p1094_p13, %p1088_p10 }
  0x20   :  { %1098 = shalt.err (!%p1095_p0)
}
  0x21   :  { %s1130_s5 = smov 256   ;;  %s1131_s20 = smov 16  }
  0x22   :  { %57 = dma.hbm_to_vmem [thread:$0]  %s1251_s6, 4096, %s52_s15, [#allocation6], %s1130_s5, %s1130_s5, %s1131_s20  }
  0x23   :  { %1119 = dma.done.wait [#allocation3], 512  }
  0x24   :  { %1120 = vsyncadd [#allocation3], 4294966784 }
  0x25   :  { %1121 = dma.done.wait [#allocation6], 8192  }
  0x26   :  { %1122 = vsyncadd [#allocation6], 4294959104  ;;  %v1132_v0 = vmov 0   ;;  %v1193_v1 = vld [vmem:[%s1246_s1] sm:$0xff]  ;;  %v943_v3 = vld [vmem:[#allocation5 + $0x78] sm:$0xff]  }
  0x27   :  { %941 = vset.pattern.permute.xlu0 %v1132_v0  ;;  %942 = vset.pattern.permute.xlu1 %v1132_v0  ;;  %v75_v2 = vmul.f32 %v1193_v1, %v1193_v1  ;;  %v944_v4 = vld [vmem:[#allocation5 + $0xf8] sm:$0xff]   ;;  %v947_v8 = vld [vmem:[#allocation5 + $0x70] sm:$0xff]   ;;  %v951_v12 = vld [vmem:[#allocation5 + $0x68] sm:$0xff]  }
  0x28   :  { %888 = vmatprep.subr.bf16.mxu0 %v943_v3  ;;  %v945_v6 = vld [vmem:[#allocation5 + $0x38] sm:$0xff]   ;;  %910 = vmatprep.subr.bf16.mxu1 %v944_v4  ;;  %v948_v9 = vld [vmem:[#allocation5 + $0xf0] sm:$0xff]   ;;  %v952_v13 = vld [vmem:[#allocation5 + $0xe8] sm:$0xff]  }
  0x29   :  { %v1197_v5 = vadd.f32 1.0, %v75_v2  ;;  %v946_v7 = vld [vmem:[#allocation5 + $0xb8] sm:$0xff]   ;;  %889 = vmatpush3.bf16.msra.mxu0 %v945_v6  ;;  %v949_v10 = vld [vmem:[#allocation5 + $0x30] sm:$0xff]   ;;  %v953_v14 = vld [vmem:[#allocation5 + $0x28] sm:$0xff]  }
  0x2a   :  { %911 = vmatpush3.bf16.msra.mxu1 %v946_v7  ;;  %890 = vmatprep.subr.bf16.mxu0 %v947_v8  ;;  %v950_v11 = vld [vmem:[#allocation5 + $0xb0] sm:$0xff]   ;;  %v954_v15 = vld [vmem:[#allocation5 + $0xa8] sm:$0xff]   ;;  %v955_v16 = vld [vmem:[#allocation5 + $0x60] sm:$0xff]  }
  0x2b   :  { %1023 = vrsqrt.f32 %v1197_v5  ;;  %912 = vmatprep.subr.bf16.mxu1 %v948_v9  ;;  %v956_v17 = vld [vmem:[#allocation5 + $0xe0] sm:$0xff]   ;;  %vm81_vm0 = vcmp.eq.f32.partialorder %v1197_v5, inf  ;;  %v959_v20 = vld [vmem:[#allocation5 + $0x58] sm:$0xff]   ;;  %v84_v22 = vand.u32 2147483648, %v1197_v5  ;;  %vm83_vm1 = vcmp.eq.f32.partialorder %v1197_v5, 0.0  ;;  %v963_v28 = vld [vmem:[#allocation5 + $0x50] sm:$0xff]  }
  0x2c   :  { %v957_v18 = vld [vmem:[#allocation5 + $0x20] sm:$0xff]   ;;  %1025 = vlog2.f32 %v1193_v1  ;;  %v960_v23 = vld [vmem:[#allocation5 + $0xd8] sm:$0xff]   ;;  %v964_v30 = vld [vmem:[#allocation5 + $0xd0] sm:$0xff]  }
  0x2d   :  { %891 = vmatpush3.bf16.msra.mxu0 %v949_v10  ;;  %v958_v19 = vld [vmem:[#allocation5 + $0xa0] sm:$0xff]   ;;  %v961_v25 = vld [vmem:[#allocation5 + $0x18] sm:$0xff]   ;;  %v965_v31 = vld [vmem:[#allocation5 + $0x10] sm:$0xff]  }
  0x2e   :  { %913 = vmatpush3.bf16.msra.mxu1 %v950_v11  ;;  %892 = vmatprep.subr.bf16.mxu0 %v951_v12  ;;  %v962_v26 = vld [vmem:[#allocation5 + $0x98] sm:$0xff]   ;;  %v966_v32 = vld [vmem:[#allocation5 + $0x90] sm:$0xff]   ;;  %v967_v33 = vld [vmem:[#allocation5 + $0x48] sm:$0xff]  }
  0x2f   :  { %914 = vmatprep.subr.bf16.mxu1 %v952_v13  ;;  %v968_v34 = vld [vmem:[#allocation5 + $0xc8] sm:$0xff]   ;;  %v971_v38 = vld [vmem:[#allocation5 + $0x40] sm:$0xff]   ;;  %v1211_v46 = vld [vmem:[#allocation2 + $0x18] sm:$0xff] }
  0x30   :  { %v969_v35 = vld [vmem:[#allocation5 + $0x8] sm:$0xff]   ;;  %v972_v39 = vld [vmem:[#allocation5 + $0xc0] sm:$0xff]   ;;  %v1215_v48 = vld [vmem:[#allocation2 + $0x10] sm:$0xff] }
  0x31   :  { %893 = vmatpush3.bf16.msra.mxu0 %v953_v14  ;;  %v970_v36 = vld [vmem:[#allocation5 + $0x88] sm:$0xff]   ;;  %v973_v40 = vld [vmem:[#allocation5] sm:$0xff]  }
  0x32   :  { %915 = vmatpush3.bf16.msra.mxu1 %v954_v15  ;;  %894 = vmatprep.subr.bf16.mxu0 %v955_v16  ;;  %v974_v42 = vld [vmem:[#allocation5 + $0x80] sm:$0xff]   ;;  %v1209_v45 = vld [vmem:[#allocation2 + $0x8] sm:$0xff] }
  0x33   :  { %916 = vmatprep.subr.bf16.mxu1 %v956_v17  ;;  %v1213_v47 = vld [vmem:[#allocation2] sm:$0xff]  ;;  %v980_v59 = vld [vmem:[#allocation7 + $0xec] ss:$16 sps:$4 sm:$0xff]   ;;  %v978_v61 = vld [vmem:[#allocation7 + $0xe8] ss:$16 sps:$4 sm:$0xff]  }
  0x34   :  { %v977_v58 = vld [vmem:[#allocation7 + $0xe4] ss:$16 sps:$4 sm:$0xff]   ;;  %v975_v60 = vld [vmem:[#allocation7 + $0xe0] ss:$16 sps:$4 sm:$0xff]   ;;  %v986_v63 = vld [vmem:[#allocation7 + $0xcc] ss:$16 sps:$4 sm:$0xff]  }
  0x35   :  { %895 = vmatpush3.bf16.msra.mxu0 %v957_v18  ;;  %v983_v62 = vld [vmem:[#allocation7 + $0xc4] ss:$16 sps:$4 sm:$0xff]   ;;  %v981_v2 = vld [vmem:[#allocation7 + $0xc0] ss:$16 sps:$4 sm:$0xff]   ;;  %v984_v3 = vld [vmem:[#allocation7 + $0xc8] ss:$16 sps:$4 sm:$0xff]  }
  0x36   :  { %917 = vmatpush3.bf16.msra.mxu1 %v958_v19  ;;  %896 = vmatprep.subr.bf16.mxu0 %v959_v20  ;;  %v989_v4 = vld [vmem:[#allocation7 + $0xa4] ss:$16 sps:$4 sm:$0xff]   ;;  %v992_v6 = vld [vmem:[#allocation7 + $0xac] ss:$16 sps:$4 sm:$0xff]   ;;  %v987_v7 = vld [vmem:[#allocation7 + $0xa0] ss:$16 sps:$4 sm:$0xff]  }
  0x37   :  { %918 = vmatprep.subr.bf16.mxu1 %v960_v23  ;;  %v995_v8 = vld [vmem:[#allocation7 + $0x84] ss:$16 sps:$4 sm:$0xff]   ;;  %v998_v9 = vld [vmem:[#allocation7 + $0x8c] ss:$16 sps:$4 sm:$0xff]   ;;  %v993_v10 = vld [vmem:[#allocation7 + $0x80] ss:$16 sps:$4 sm:$0xff]  }
  0x38   :  { %v1024_v21 = vpop.eup %1023  ;;  %v996_v11 = vld [vmem:[#allocation7 + $0x88] ss:$16 sps:$4 sm:$0xff]   ;;  %v1001_v12 = vld [vmem:[#allocation7 + $0x64] ss:$16 sps:$4 sm:$0xff]   ;;  %v1004_v13 = vld [vmem:[#allocation7 + $0x6c] ss:$16 sps:$4 sm:$0xff]  }
  0x39   :  { %v80_v24 = vmul.f32 %v1024_v21, %v1197_v5  ;;  %897 = vmatpush3.bf16.msra.mxu0 %v961_v25  ;;  %v1026_v37 = vpop.eup %1025  ;;  %v999_v14 = vld [vmem:[#allocation7 + $0x60] ss:$16 sps:$4 sm:$0xff]   ;;  %v1002_v15 = vld [vmem:[#allocation7 + $0x68] ss:$16 sps:$4 sm:$0xff]   ;;  %v1007_v16 = vld [vmem:[#allocation7 + $0x44] ss:$16 sps:$4 sm:$0xff]  }
  0x3a   :  { %919 = vmatpush3.bf16.msra.mxu1 %v962_v26  ;;  %898 = vmatprep.subr.bf16.mxu0 %v963_v28  ;;  %v90_v41 = vmul.f32 0.6931472, %v1026_v37  ;;  %v1010_v17 = vld [vmem:[#allocation7 + $0x4c] ss:$16 sps:$4 sm:$0xff]   ;;  %v1005_v18 = vld [vmem:[#allocation7 + $0x40] ss:$16 sps:$4 sm:$0xff]  }
  0x3b   :  { %v82_v27 = vsel %vm81_vm0, %v1197_v5, %v80_v24  ;;  %920 = vmatprep.subr.bf16.mxu1 %v964_v30  ;;  %v1008_v19 = vld [vmem:[#allocation7 + $0x48] ss:$16 sps:$4 sm:$0xff]   ;;  %v1013_v20 = vld [vmem:[#allocation7 + $0x24] ss:$16 sps:$4 sm:$0xff]   ;;  %v1016_v21 = vld [vmem:[#allocation7 + $0x2c] ss:$16 sps:$4 sm:$0xff]  }
  0x3c   :  { %v85_v29 = vsel %vm83_vm1, %v84_v22, %v82_v27  ;;  %v91_v44 = vmul.f32 10.0, %v90_v41  ;;  %v1011_v22 = vld [vmem:[#allocation7 + $0x20] ss:$16 sps:$4 sm:$0xff]   ;;  %v1014_v23 = vld [vmem:[#allocation7 + $0x28] ss:$16 sps:$4 sm:$0xff]  }
  0x3d   :  { %1027 = vrcp.f32 %v85_v29  ;;  %899 = vmatpush3.bf16.msra.mxu0 %v965_v31  ;;  %v1019_v24 = vld [vmem:[#allocation7 + $0x4] ss:$16 sps:$4 sm:$0xff]   ;;  %v1022_v25 = vld [vmem:[#allocation7 + $0xc] ss:$16 sps:$4 sm:$0xff]   ;;  %v1017_v26 = vld [vmem:[#allocation7] ss:$16 sps:$4 sm:$0xff]  }
  0x3e   :  { %921 = vmatpush3.bf16.msra.mxu1 %v966_v32  ;;  %900 = vmatprep.subr.bf16.mxu0 %v967_v33  ;;  %v1020_v27 = vld [vmem:[#allocation7 + $0x8] ss:$16 sps:$4 sm:$0xff]   ;;  %1029 = vrcp.f32 %v1197_v5  ;;  %v821_v30 = vld [vmem:[%s1247_s2] ss:$0 sm:$0xff] }
  0x3f   :  { %922 = vmatprep.subr.bf16.mxu1 %v968_v34  ;;  %v822_v33 = vld [vmem:[%s1248_s3] ss:$0 sm:$0xff] }
  0x41   :  { %901 = vmatpush3.bf16.msra.mxu0 %v969_v35 }
  0x42   :  { %923 = vmatpush3.bf16.msra.mxu1 %v970_v36  ;;  %902 = vmatprep.subr.bf16.mxu0 %v971_v38 }
  0x43   :  { %924 = vmatprep.subr.bf16.mxu1 %v972_v39  ;;  %v823_v39 = vld [vmem:[%s1249_s4] ss:$0 sm:$0xff]  ;;  %s1133_s4 = smov [#allocation8]  }
  0x45   :  { %903 = vmatpush3.bf16.msra.mxu0 %v973_v40 }
  0x46   :  { %925 = vmatpush3.bf16.msra.mxu1 %v974_v42  ;;  %697 = vmatprep.subr.bf16.mxu0 %v977_v58 }
  0x47   :  { %738 = vmatprep.subr.bf16.mxu1 %v980_v59 }
  0x4a   :  { %v1206_v43 = vpop.eup %1027 }
  0x4b   :  { %121 = vperm.xlu0 %941, %v1206_v43   ;;  %v1030_v28 = vpop.eup %1029  ;;  %v88_v29 = vmul.f32 %v1206_v43, %v1193_v1 }
  0x4c   :  { %781 = vperm.xlu1 %942, %v1030_v28  }
  0x4f   :  { %95 = vperm.xlu0 %941, %v91_v44  }
  0x50   :  { %790 = vperm.xlu1 %942, %v88_v29  }
  0xc6   :  { %v122_v49 = vpop.permute.xlu0 %121 }
  0xc7   :  { %v125_v50 = vmul.f32 %v122_v49, %v1209_v45  ;;  %v127_v51 = vmul.f32 %v122_v49, %v1211_v46  ;;  %v124_v52 = vmul.f32 %v122_v49, %v1213_v47  ;;  %v126_v53 = vmul.f32 %v122_v49, %v1215_v48 }
  0xc9   :  { %v129_v54 = vpack.c.bf16 %v125_v50, %v125_v50  ;;  %v131_v55 = vpack.c.bf16 %v127_v51, %v127_v51  ;;  %v128_v56 = vpack.c.bf16 %v124_v52, %v124_v52  ;;  %v130_v57 = vpack.c.bf16 %v126_v53, %v126_v53 }
  0xca   :  { %v96_v31 = vpop.permute.xlu0 %95 }
  0xcb   :  { %427 = vmatprep.mubr.bf16.mxu0 %v129_v54  ;;  %467 = vmatprep.mubr.bf16.mxu1 %v131_v55  ;;  %v104_v32 = vmul.f32 %v821_v30, %v96_v31 }
  0xcc   :  { %428 = vmatmul.mubr.bf16.vlgmr.msra.gmra.mxu0 %v128_v56  ;;  %468 = vmatmul.mubr.bf16.vlgmr.msra.gmra.mxu1 %v130_v57 }
  0xcd   :  { %729 = vmatprep.mubr.bf16.mxu0 %v1132_v0  ;;  %770 = vmatprep.mubr.bf16.mxu1 %v1132_v0  ;;  %v990_v0 = vld [vmem:[#allocation7 + $0xa8] ss:$16 sps:$4 sm:$0xff]   ;;  %v112_v34 = vadd.f32 %v822_v33, %v104_v32 }
  0xce   :  { %698 = vmatpush1.bf16.msra.mxu0 %v975_v60  ;;  %739 = vmatpush1.bf16.msra.mxu1 %v978_v61 }
  0xcf   :  { %699 = vmatprep.subr.bf16.mxu0 %v983_v62  ;;  %740 = vmatprep.subr.bf16.mxu1 %v986_v63  ;;  %v113_v35 = vsub.f32 0.0, %v112_v34 }
  0xd1   :  { %v114_v36 = vmul.f32 1.442695, %v113_v35 }
  0xd2   :  { %700 = vmatpush1.bf16.msra.mxu0 %v981_v2  ;;  %741 = vmatpush1.bf16.msra.mxu1 %v984_v3  ;;  %v517_v2 = vlaneseq }
  0xd3   :  { %701 = vmatprep.subr.bf16.mxu0 %v989_v4  ;;  %742 = vmatprep.subr.bf16.mxu1 %v992_v6  ;;  %1031 = vpow2.f32 %v114_v36 }
  0xd4   :  { %v518_v3 = vshrl.u32 %v517_v2, 7 }
  0xd6   :  { %702 = vmatpush1.bf16.msra.mxu0 %v987_v7  ;;  %743 = vmatpush1.bf16.msra.mxu1 %v990_v0  ;;  %v519_v4 = vsub.s32 0, %v518_v3  ;;  %v527_v6 = vsub.s32 2, %v518_v3  ;;  %v515_v7 = vld [vmem:[%s1252_s7] sm:$0xf]  ;;  %v782_v0 = vpop.permute.xlu1 %781  ;;  %s811_s7 = sshll.u32 %s1133_s4, 4  ;;  %s812_s7 = int_to_ptr.vmem [resolvable:$true] %s811_s7 }
  0xd7   :  { %703 = vmatprep.subr.bf16.mxu0 %v995_v8  ;;  %744 = vmatprep.subr.bf16.mxu1 %v998_v9  ;;  %v523_v8 = vsub.s32 1, %v518_v3  ;;  %v531_v9 = vsub.s32 3, %v518_v3  ;;  %v787_v28 = vmul.f32 %v782_v0, %v1211_v46  ;;  %s1099_s28 = scalar_lea.vmem %s812_s7, 512  ;;  %p1104_p2 = scmp.lt.s32.totalorder %s812_s7, %s812_s7 }
  0xd8   :  { %p1100_p1 = scmp.ne.s32.totalorder %s812_s7, %s1099_s28  ;;  %p1105_p3 = scmp.lt.s32.totalorder %s1099_s28, %s1099_s28 }
  0xda   :  { %704 = vmatpush1.bf16.msra.mxu0 %v993_v10  ;;  %745 = vmatpush1.bf16.msra.mxu1 %v996_v11  ;;  %v520_v10 = vrot.slane %v515_v7, %v519_v4  ;;  %v528_v11 = vrot.slane %v515_v7, %v527_v6  ;;  %p1106_p4 = por %p1105_p3, %p1104_p2 }
  0xdb   :  { %705 = vmatprep.subr.bf16.mxu0 %v1001_v12  ;;  %746 = vmatprep.subr.bf16.mxu1 %v1004_v13  ;;  %v524_v12 = vrot.slane %v515_v7, %v523_v8  ;;  %v532_v13 = vrot.slane %v515_v7, %v531_v9 }
  0xdc   :  { %p1107_p5 = pnand %p1106_p4, %p1100_p1 }
  0xde   :  { %706 = vmatpush1.bf16.msra.mxu0 %v999_v14  ;;  %747 = vmatpush1.bf16.msra.mxu1 %v1002_v15 }
  0xdf   :  { %707 = vmatprep.subr.bf16.mxu0 %v1007_v16  ;;  %748 = vmatprep.subr.bf16.mxu1 %v1010_v17  ;;  %v791_v16 = vpop.permute.xlu1 %790 }
  0xe0   :  { %v1032_v5 = vpop.eup %1031 }
  0xe1   :  { %v116_v37 = vadd.f32 1.0, %v1032_v5 }
  0xe2   :  { %708 = vmatpush1.bf16.msra.mxu0 %v1005_v18  ;;  %749 = vmatpush1.bf16.msra.mxu1 %v1008_v19  ;;  %v784_v19 = vmul.f32 %v782_v0, %v1213_v47 }
  0xe3   :  { %709 = vmatprep.subr.bf16.mxu0 %v1013_v20  ;;  %750 = vmatprep.subr.bf16.mxu1 %v1016_v21  ;;  %1033 = vrcp.f32 %v116_v37  ;;  %v786_v20 = vmul.f32 %v782_v0, %v1215_v48 }
  0xe6   :  { %710 = vmatpush1.bf16.msra.mxu0 %v1011_v22  ;;  %751 = vmatpush1.bf16.msra.mxu1 %v1014_v23 }
  0xe7   :  { %711 = vmatprep.subr.bf16.mxu0 %v1019_v24  ;;  %752 = vmatprep.subr.bf16.mxu1 %v1022_v25 }
  0xea   :  { %712 = vmatpush1.bf16.msra.mxu0 %v1017_v26  ;;  %753 = vmatpush1.bf16.msra.mxu1 %v1020_v27  ;;  %v785_v27 = vmul.f32 %v782_v0, %v1209_v45 }
  0xf0   :  { %v1034_v43 = vpop.eup %1033 }
  0xf1   :  { %v118_v54 = vmul.f32 %v1034_v43, %v112_v34 }
 0x18c   :  { %v904_v38 = vpop.f32.mrf.mxu0  ;;  %v926_v1 = vpop.f32.mrf.mxu1 }
 0x18e   :  { %v905_v40 = vpop.f32.mrf.mxu0  ;;  %v927_v41 = vpop.f32.mrf.mxu1 }
 0x18f   :  { %v906_v42 = vadd.f32 %v905_v40, %v904_v38  ;;  %v928_v51 = vadd.f32 %v927_v41, %v926_v1 }
 0x190   :  { %v907_v44 = vpop.f32.mrf.mxu0  ;;  %v929_v49 = vpop.f32.mrf.mxu1 }
 0x191   :  { %v430_v50 = vadd.f32 %v906_v42, %v823_v39 }
 0x192   :  { %v908_v52 = vpop.f32.mrf.mxu0  ;;  %v930_v53 = vpop.f32.mrf.mxu1 }
 0x193   :  { %v470_v55 = vadd.f32 %v928_v51, %v430_v50 }
 0x195   :  { %v475_v56 = vadd.f32 %v470_v55, %v118_v54 }
 0x197   :  { %v476_v57 = vsub.f32 0.0, %v475_v56 }
 0x199   :  { %v477_v58 = vmul.f32 1.442695, %v476_v57 }
 0x19b   :  { %1035 = vpow2.f32 %v477_v58 }
 0x1a8   :  { %v1036_v59 = vpop.eup %1035 }
 0x1a9   :  { %v479_v60 = vadd.f32 1.0, %v1036_v59 }
 0x1ab   :  { %1037 = vrcp.f32 %v479_v60 }
 0x1b8   :  { %v1038_v61 = vpop.eup %1037 }
 0x1b9   :  { %v481_v62 = vmul.f32 %v1038_v61, %v475_v56 }
 0x1bb   :  { %v482_v63 = vpack.c.bf16 %v481_v62, %v481_v62 }
 0x1bd   :  { %730 = vmatmul.mubr.bf16.vlgmr.msra.gmra.mxu0 %v482_v63  ;;  %771 = vmatmul.mubr.bf16.vlgmr.msra.gmra.mxu1 %v482_v63 }
 0x27d   :  { %v731_v14 = vpop.f32.mrf.mxu0  ;;  %v772_v15 = vpop.f32.mrf.mxu1 }
 0x27e   :  { %v732_v17 = vadd.f32 %v731_v14, %v520_v10  ;;  %v773_v18 = vadd.f32 %v772_v15, %v528_v11 }
 0x27f   :  { %v733_v21 = vpop.f32.mrf.mxu0  ;;  %v774_v22 = vpop.f32.mrf.mxu1 }
 0x280   :  { %v793_v23 = vmul.f32 %v791_v16, %v732_v17  ;;  %v795_v24 = vmul.f32 %v791_v16, %v773_v18  ;;  %v734_v25 = vadd.f32 %v733_v21, %v524_v12  ;;  %v775_v26 = vadd.f32 %v774_v22, %v532_v13 }
 0x281   :  { %v735_v29 = vpop.f32.mrf.mxu0  ;;  %v776_v30 = vpop.f32.mrf.mxu1 }
 0x282   :  { %v797_v31 = vadd.f32 %v793_v23, %v784_v19  ;;  %v799_v32 = vadd.f32 %v795_v24, %v786_v20  ;;  %v794_v33 = vmul.f32 %v791_v16, %v734_v25  ;;  %v796_v47 = vmul.f32 %v791_v16, %v775_v26 }
 0x283   :  { %v736_v34 = vpop.f32.mrf.mxu0  ;;  %v777_v48 = vpop.f32.mrf.mxu1 }
 0x284   :  { %801 = vst [vmem:[#allocation8] sm:$0xff] %v797_v31  ;;  %803 = vst [vmem:[#allocation8 + $0x10] sm:$0xff] %v799_v32  ;;  %v798_v35 = vadd.f32 %v794_v33, %v785_v27  ;;  %v800_v36 = vadd.f32 %v796_v47, %v787_v28 }
 0x286   :  { %802 = vst [vmem:[#allocation8 + $0x8] sm:$0xff] %v798_v35  ;;  %804 = vst [vmem:[#allocation8 + $0x18] sm:$0xff] %v800_v36 }
 0x287   :  { %1110 = shalt.err (!%p1107_p5)
}
 0x288   :  { %814 = dma.vmem_to_hbm [thread:$0]  %s812_s7, 512, %s1253_s8, [#allocation4]  }
 0x289   :  { %1123 = dma.done.wait [#allocation4], 512  }
 0x28a   :  { %1124 = vsyncadd [#allocation4], 4294966784 }
 0x28b   :  { %818 = vsyncpa [#allocation3], 1 }
 0x28c   :  { %819 = vsyncpa [#allocation6], 1 }
 0x28d   :  { %820 = vsyncpa [#allocation4], 1 }

</bundles_post_ra>
